<compile_context>
chip_gen: v7x
topology: tpu7x:2x2x1
jax: 0.10.0
libtpu: 0.0.40
codegen_flags: <defaults>
</compile_context>

<pallas_src>
import functools

import jax
import jax.numpy as jnp
from jax.experimental import pallas as pl
from jax.experimental.pallas import tpu as pltpu

HIDDEN = 256          # hard-coded hidden width in the PyTorch module
NUM_CLASSES = 4       # _cls_predictor output dim


def _round_up(x, m):
    return ((x + m - 1) // m) * m


# ---------------------------------------------------------------------------
# Fused kernel: encoder (pt MLP + class linear) + all three prediction heads
# ---------------------------------------------------------------------------
def fused_kernel(pt_ref, cls_ref,
                 w1_ref, b1_ref, w2_ref, b2_ref, wc_ref, bc_ref,
                 wh_ref, bh_ref,
                 out_ref):
    # --- pt encoder: relu(pt @ W1 + b1) @ W2 + b2  (MXU in bf16, f32 accum) ---
    pt = pt_ref[...]                                                # (tile, 2P) bf16
    h = jnp.dot(pt, w1_ref[...], preferred_element_type=jnp.float32) + b1_ref[...]
    h = jnp.maximum(h, 0.0)                                         # f32 ReLU (VPU)
    feat = jnp.dot(h.astype(jnp.bfloat16), w2_ref[...],
                   preferred_element_type=jnp.float32) + b2_ref[...]

    # --- class encoder: K=1 Linear == scalar * row(Wc) + bc  (pure VPU) ---
    feat = feat + cls_ref[...] * wc_ref[...] + bc_ref[...]          # (tile, 256) f32

    # --- fused heads: one (256 -> 4+3P padded to 128-lane multiple) matmul ---
    y = jnp.dot(feat.astype(jnp.bfloat16), wh_ref[...],
                preferred_element_type=jnp.float32) + bh_ref[...]   # (tile, Dpad) f32

    # sigmoid for confidence / coord columns; raw logits for the 4 cls columns.
    col = jax.lax.broadcasted_iota(jnp.int32, y.shape, dimension=1)
    y = jnp.where(col >= NUM_CLASSES, jax.nn.sigmoid(y), y)

    out_ref[...] = y.astype(out_ref.dtype)


# ---------------------------------------------------------------------------
# Wrapper
# ---------------------------------------------------------------------------
@functools.partial(jax.jit, static_argnames=("road_pt_pad_num", "tile_rows"))
def fused_forward(pt_data, class_data, params, *, road_pt_pad_num, tile_rows=1024):
    """pt_data: (N, 2P) f32, class_data: (N, 1) f32 ->
       cls (N,4), conf (N,P), coord (N,2P)  (all f32)."""
    n, two_p = pt_data.shape
    p = road_pt_pad_num
    d_out = NUM_CLASSES + 3 * p
    d_pad = _round_up(d_out, 128)          # lane-dense output slab width

    # Balanced row tiling: bounded padding waste, large tiles for big N.
    n16 = _round_up(max(n, 16), 16)
    num_tiles = -(-n16 // tile_rows)                    # ceil div (python ints)
    tile = _round_up(-(-n16 // num_tiles), 16)          # per-tile rows, sublane safe
    n_pad = tile * num_tiles
    if n_pad != n:
        pt_data = jnp.pad(pt_data, ((0, n_pad - n), (0, 0)))
        class_data = jnp.pad(class_data, ((0, n_pad - n), (0, 0)))

    # bf16 activations / weights for the MXU; biases + VPU path stay f32.
    pt_bf16 = pt_data.astype(jnp.bfloat16)
    w1 = params["w1"].astype(jnp.bfloat16)
    w2 = params["w2"].astype(jnp.bfloat16)
    b1, b2 = params["b1"], params["b2"]
    wc, bc = params["wc"], params["bc"]    # (1, 256) f32, used on the VPU

    # Fuse the three head weights into one lane-padded matrix.
    wh = jnp.concatenate([params["wcls"], params["wconf"], params["wcoord"]], axis=1)
    bh = jnp.concatenate([params["bcls"], params["bconf"], params["bcoord"]], axis=1)
    wh = jnp.pad(wh, ((0, 0), (0, d_pad - d_out))).astype(jnp.bfloat16)
    bh = jnp.pad(bh, ((0, 0), (0, d_pad - d_out)))

    def _full(shape):
        return pl.BlockSpec(shape, lambda i: (0,) * len(shape))

    grid = (num_tiles,)
    slab = pl.pallas_call(
        fused_kernel,
        out_shape=jax.ShapeDtypeStruct((n_pad, d_pad), jnp.float32),
        grid_spec=pltpu.PrefetchScalarGridSpec(
            num_scalar_prefetch=0,
            grid=grid,
            in_specs=[
                pl.BlockSpec((tile, two_p), lambda i: (i, 0)),   # pt tokens
                pl.BlockSpec((tile, 1), lambda i: (i, 0)),       # class scalar
                _full(w1.shape), _full(b1.shape),
                _full(w2.shape), _full(b2.shape),
                _full(wc.shape), _full(bc.shape),
                _full(wh.shape), _full(bh.shape),
            ],
            out_specs=pl.BlockSpec((tile, d_pad), lambda i: (i, 0)),
        ),
        compiler_params=pltpu.CompilerParams(
            dimension_semantics=("parallel",)),
    )(pt_bf16, class_data, w1, b1, w2, b2, wc, bc, wh, bh)

    slab = slab[:n]                                     # drop padded rows
    cls_pred = slab[:, :NUM_CLASSES]
    conf_pred = slab[:, NUM_CLASSES:NUM_CLASSES + p]
    coord_pred = slab[:, NUM_CLASSES + p:NUM_CLASSES + 3 * p]
    return cls_pred, conf_pred, coord_pred


def adapt_inputs(pts, classes, paddings):
    """Mirrors Model.adapt_inputs (torch.flatten -> jnp.reshape)."""
    b, h, e = classes.shape
    class_data = classes.reshape(b, h * e, 1)
    pt_data = pts.reshape(b, h * e, pts.shape[3] * pts.shape[4])
    key_padding_mask = paddings.reshape(b, h * e)
    return pt_data, class_data, key_padding_mask


def init_params(key, road_pt_pad_num):
    """Deterministic synthetic parameters (shapes dictated by Model.__init__)."""
    ks = jax.random.split(key, 12)
    p = road_pt_pad_num
    s = 0.05
    return {
        # _pt_data_encoder: MLP(2P, 256, 256, 2)
        "w1": s * jax.random.normal(ks[0], (2 * p, HIDDEN), jnp.float32),
        "b1": s * jax.random.normal(ks[1], (1, HIDDEN), jnp.float32),
        "w2": s * jax.random.normal(ks[2], (HIDDEN, HIDDEN), jnp.float32),
        "b2": s * jax.random.normal(ks[3], (1, HIDDEN), jnp.float32),
        # _class_data_encoder: MLP(1, 256, 256, 1)
        "wc": s * jax.random.normal(ks[4], (1, HIDDEN), jnp.float32),
        "bc": s * jax.random.normal(ks[5], (1, HIDDEN), jnp.float32),
        # _cls_predictor: MLP(256, 256, 4, 1)
        "wcls": s * jax.random.normal(ks[6], (HIDDEN, NUM_CLASSES), jnp.float32),
        "bcls": s * jax.random.normal(ks[7], (1, NUM_CLASSES), jnp.float32),
        # _point_confidence_predictor: MLP(256, 256, P, 1)
        "wconf": s * jax.random.normal(ks[8], (HIDDEN, p), jnp.float32),
        "bconf": s * jax.random.normal(ks[9], (1, p), jnp.float32),
        # _point_coord_predictor: MLP(256, 256, 2P, 1)
        "wcoord": s * jax.random.normal(ks[10], (HIDDEN, 2 * p), jnp.float32),
        "bcoord": s * jax.random.normal(ks[11], (1, 2 * p), jnp.float32),
    }


def model_forward(pts, classes, paddings, params, road_pt_pad_num):
    """One frame of Model.common_forward (defined compute only)."""
    b, he = classes.shape[0], classes.shape[1] * classes.shape[2]
    pt_data, class_data, _key_padding_mask = adapt_inputs(pts, classes, paddings)

    # TODO(synk): transformer(src, mask, pos_embed, query_embed) is an injected,
    # undefined dependency; track_queries is stood in by road_features, which is
    # why the encoder and heads can be fused into a single kernel pass here.
    cls_pred, conf_pred, coord_pred = fused_forward(
        pt_data.reshape(b * he, -1), class_data.reshape(b * he, 1), params,
        road_pt_pad_num=road_pt_pad_num)

    # track_score = max(softmax(cls_pred)) over only 4 logits -> trivial in XLA.
    track_score = jnp.max(jax.nn.softmax(cls_pred, axis=-1), axis=-1)

    # reshape back like the PyTorch module
    cls_pred = cls_pred.reshape(b, he, NUM_CLASSES)
    conf_pred = conf_pred.reshape(b, he, road_pt_pad_num)
    coord_pred = coord_pred.reshape(b, -1, road_pt_pad_num, 2)
    track_score = track_score.reshape(b, he)

    return {
        "cls_pred": cls_pred,
        "point_confidence_pred": conf_pred,
        "point_coord_pred": coord_pred,
        "track_score": track_score,
    }


if __name__ == "__main__":
    # Small shapes (reference docstring: pts [2,15,50,350,2]; scaled down)
    B, H, E = 2, 3, 8          # batch, history frames, padded road elements
    P = 16                     # road_pt_pad_num

    key = jax.random.PRNGKey(0)
    k_pts, k_cls, k_par = jax.random.split(key, 3)

    pts = jax.random.normal(k_pts, (B, H, E, P, 2), jnp.float32)
    classes = jax.random.randint(k_cls, (B, H, E), 0, 4).astype(jnp.float32)
    paddings = jnp.zeros((B, H, E), jnp.float32)

    params = init_params(k_par, P)

    outputs = model_forward(pts, classes, paddings, params, P)
    jax.block_until_ready(outputs)

    # light sanity checks
    assert outputs["cls_pred"].shape == (B, H * E, NUM_CLASSES)
    assert outputs["point_confidence_pred"].shape == (B, H * E, P)
    assert outputs["point_coord_pred"].shape == (B, H * E, P, 2)
    assert outputs["track_score"].shape == (B, H * E)
    assert bool(jnp.all(jnp.isfinite(outputs["cls_pred"])))
    assert bool(jnp.all((outputs["point_confidence_pred"] >= 0)
                        & (outputs["point_confidence_pred"] <= 1)))
    assert bool(jnp.all((outputs["point_coord_pred"] >= 0)
                        & (outputs["point_coord_pred"] <= 1)))
    assert bool(jnp.all((outputs["track_score"] > 0)
                        & (outputs["track_score"] <= 1)))

    # pure-JAX reference check (f32 reference vs bf16-matmul kernel)
    pt_flat = pts.reshape(B * H * E, 2 * P)
    cls_flat = classes.reshape(B * H * E, 1)
    h_ref = jnp.maximum(pt_flat @ params["w1"] + params["b1"], 0.0)
    feat_ref = h_ref @ params["w2"] + params["b2"] + cls_flat @ params["wc"] + params["bc"]
    cls_ref = feat_ref @ params["wcls"] + params["bcls"]
    conf_ref = jax.nn.sigmoid(feat_ref @ params["wconf"] + params["bconf"])
    coord_ref = jax.nn.sigmoid(feat_ref @ params["wcoord"] + params["bcoord"])
    assert bool(jnp.allclose(outputs["cls_pred"].reshape(-1, NUM_CLASSES),
                             cls_ref, atol=5e-2, rtol=5e-2))
    assert bool(jnp.allclose(outputs["point_confidence_pred"].reshape(-1, P),
                             conf_ref, atol=5e-2, rtol=5e-2))
    assert bool(jnp.allclose(outputs["point_coord_pred"].reshape(-1, 2 * P),
                             coord_ref.reshape(-1, 2 * P), atol=5e-2, rtol=5e-2))

    print("KERNEL_OK")
</pallas_src>

<mosaic_0001>
module attributes {stable_mosaic.version = 11 : i64} {
  func.func @fused_kernel(%arg0: i32, %arg1: memref<48x32xbf16, #tpu.memory_space<vmem>>, %arg2: memref<48x1xf32, #tpu.memory_space<vmem>>, %arg3: memref<32x256xbf16, #tpu.memory_space<vmem>>, %arg4: memref<1x256xf32, #tpu.memory_space<vmem>>, %arg5: memref<256x256xbf16, #tpu.memory_space<vmem>>, %arg6: memref<1x256xf32, #tpu.memory_space<vmem>>, %arg7: memref<1x256xf32, #tpu.memory_space<vmem>>, %arg8: memref<1x256xf32, #tpu.memory_space<vmem>>, %arg9: memref<256x128xbf16, #tpu.memory_space<vmem>>, %arg10: memref<1x128xf32, #tpu.memory_space<vmem>>, %arg11: memref<48x128xf32, #tpu.memory_space<vmem>>) attributes {dimension_semantics = [#tpu.dimension_semantics<parallel>], iteration_bounds = array<i64: 1>, scalar_prefetch = 0 : i64, scratch_operands = 0 : i64, tpu.core_type = #tpu.core_type<tc>, window_params = [{transform_indices = @transform_0, window_bounds = array<i64: 48, 32>}, {transform_indices = @transform_1, window_bounds = array<i64: 48, 1>}, {pipeline_mode = #tpu.pipeline_mode<synchronous>, transform_indices = @transform_2, window_bounds = array<i64: 32, 256>}, {pipeline_mode = #tpu.pipeline_mode<synchronous>, transform_indices = @transform_3, window_bounds = array<i64: 1, 256>}, {pipeline_mode = #tpu.pipeline_mode<synchronous>, transform_indices = @transform_4, window_bounds = array<i64: 256, 256>}, {pipeline_mode = #tpu.pipeline_mode<synchronous>, transform_indices = @transform_5, window_bounds = array<i64: 1, 256>}, {pipeline_mode = #tpu.pipeline_mode<synchronous>, transform_indices = @transform_6, window_bounds = array<i64: 1, 256>}, {pipeline_mode = #tpu.pipeline_mode<synchronous>, transform_indices = @transform_7, window_bounds = array<i64: 1, 256>}, {pipeline_mode = #tpu.pipeline_mode<synchronous>, transform_indices = @transform_8, window_bounds = array<i64: 256, 128>}, {pipeline_mode = #tpu.pipeline_mode<synchronous>, transform_indices = @transform_9, window_bounds = array<i64: 1, 128>}, {transform_indices = @transform_10, window_bounds = array<i64: 48, 128>}]} {
    %c0 = arith.constant 0 : index
    %c0_0 = arith.constant 0 : index
    %0 = vector.load %arg1[%c0, %c0_0] : memref<48x32xbf16, #tpu.memory_space<vmem>>, vector<48x32xbf16>
    %c0_1 = arith.constant 0 : index
    %c0_2 = arith.constant 0 : index
    %1 = vector.load %arg3[%c0_1, %c0_2] : memref<32x256xbf16, #tpu.memory_space<vmem>>, vector<32x256xbf16>
    %cst = arith.constant dense<0.000000e+00> : vector<48x256xf32>
    %2 = tpu.matmul %0, %1, %cst {dimension_numbers = #tpu.dot_dimension_numbers<[1], [0], [0], [1], [0, 0, 1, 1], [], []>} : vector<48x32xbf16>, vector<32x256xbf16>, vector<48x256xf32> -> vector<48x256xf32>
    %c0_3 = arith.constant 0 : index
    %c0_4 = arith.constant 0 : index
    %3 = vector.load %arg4[%c0_3, %c0_4] : memref<1x256xf32, #tpu.memory_space<vmem>>, vector<1x256xf32>
    %4 = vector.broadcast %3 : vector<1x256xf32> to vector<48x256xf32>
    %5 = arith.addf %2, %4 : vector<48x256xf32>
    %cst_5 = arith.constant 0.000000e+00 : f32
    %6 = vector.broadcast %cst_5 : f32 to vector<48x256xf32>
    %7 = arith.maximumf %5, %6 : vector<48x256xf32>
    %8 = arith.truncf %7 : vector<48x256xf32> to vector<48x256xbf16>
    %c0_6 = arith.constant 0 : index
    %c0_7 = arith.constant 0 : index
    %9 = vector.load %arg5[%c0_6, %c0_7] : memref<256x256xbf16, #tpu.memory_space<vmem>>, vector<256x256xbf16>
    %cst_8 = arith.constant dense<0.000000e+00> : vector<48x256xf32>
    %10 = tpu.matmul %8, %9, %cst_8 {dimension_numbers = #tpu.dot_dimension_numbers<[1], [0], [0], [1], [0, 0, 1, 1], [], []>} : vector<48x256xbf16>, vector<256x256xbf16>, vector<48x256xf32> -> vector<48x256xf32>
    %c0_9 = arith.constant 0 : index
    %c0_10 = arith.constant 0 : index
    %11 = vector.load %arg6[%c0_9, %c0_10] : memref<1x256xf32, #tpu.memory_space<vmem>>, vector<1x256xf32>
    %12 = vector.broadcast %11 : vector<1x256xf32> to vector<48x256xf32>
    %13 = arith.addf %10, %12 : vector<48x256xf32>
    %c0_11 = arith.constant 0 : index
    %c0_12 = arith.constant 0 : index
    %14 = vector.load %arg2[%c0_11, %c0_12] : memref<48x1xf32, #tpu.memory_space<vmem>>, vector<48x1xf32>
    %c0_13 = arith.constant 0 : index
    %c0_14 = arith.constant 0 : index
    %15 = vector.load %arg7[%c0_13, %c0_14] : memref<1x256xf32, #tpu.memory_space<vmem>>, vector<1x256xf32>
    %16 = vector.broadcast %14 : vector<48x1xf32> to vector<48x256xf32>
    %17 = vector.broadcast %15 : vector<1x256xf32> to vector<48x256xf32>
    %18 = arith.mulf %16, %17 : vector<48x256xf32>
    %19 = arith.addf %13, %18 : vector<48x256xf32>
    %c0_15 = arith.constant 0 : index
    %c0_16 = arith.constant 0 : index
    %20 = vector.load %arg8[%c0_15, %c0_16] : memref<1x256xf32, #tpu.memory_space<vmem>>, vector<1x256xf32>
    %21 = vector.broadcast %20 : vector<1x256xf32> to vector<48x256xf32>
    %22 = arith.addf %19, %21 : vector<48x256xf32>
    %23 = arith.truncf %22 : vector<48x256xf32> to vector<48x256xbf16>
    %c0_17 = arith.constant 0 : index
    %c0_18 = arith.constant 0 : index
    %24 = vector.load %arg9[%c0_17, %c0_18] : memref<256x128xbf16, #tpu.memory_space<vmem>>, vector<256x128xbf16>
    %cst_19 = arith.constant dense<0.000000e+00> : vector<48x128xf32>
    %25 = tpu.matmul %23, %24, %cst_19 {dimension_numbers = #tpu.dot_dimension_numbers<[1], [0], [0], [1], [0, 0, 1, 1], [], []>} : vector<48x256xbf16>, vector<256x128xbf16>, vector<48x128xf32> -> vector<48x128xf32>
    %c0_20 = arith.constant 0 : index
    %c0_21 = arith.constant 0 : index
    %26 = vector.load %arg10[%c0_20, %c0_21] : memref<1x128xf32, #tpu.memory_space<vmem>>, vector<1x128xf32>
    %27 = vector.broadcast %26 : vector<1x128xf32> to vector<48x128xf32>
    %28 = arith.addf %25, %27 : vector<48x128xf32>
    %29 = tpu.iota {dimensions = array<i32: 1>} : vector<48x128xi32>
    %c4_i32 = arith.constant 4 : i32
    %30 = vector.broadcast %c4_i32 : i32 to vector<48x128xi32>
    %31 = arith.cmpi sge, %29, %30 : vector<48x128xi32>
    %32 = arith.negf %28 : vector<48x128xf32>
    %33 = math.exp %32 : vector<48x128xf32>
    %cst_22 = arith.constant 1.000000e+00 : f32
    %34 = vector.broadcast %cst_22 : f32 to vector<48x128xf32>
    %35 = arith.addf %34, %33 : vector<48x128xf32>
    %36 = arith.divf %34, %35 : vector<48x128xf32>
    %37 = arith.select %31, %36, %28 : vector<48x128xi1>, vector<48x128xf32>
    %c0_23 = arith.constant 0 : index
    %c0_24 = arith.constant 0 : index
    %38 = vector.load %arg11[%c0_23, %c0_24] : memref<48x128xf32, #tpu.memory_space<vmem>>, vector<48x128xf32>
    tpu.vector_store %arg11[%c0_23, %c0_24], %37 {strides = array<i32>} : memref<48x128xf32, #tpu.memory_space<vmem>>, vector<48x128xf32>,
    return
  }
  func.func @transform_0(%arg0: i32) -> (i32, i32) {
    %c0_i32 = arith.constant 0 : i32
    %c0_i32_0 = arith.constant 0 : i32
    return %arg0, %c0_i32 : i32, i32
  }
  func.func @transform_1(%arg0: i32) -> (i32, i32) {
    %c0_i32 = arith.constant 0 : i32
    %c0_i32_0 = arith.constant 0 : i32
    return %arg0, %c0_i32 : i32, i32
  }
  func.func @transform_2(%arg0: i32) -> (i32, i32) {
    %c0_i32 = arith.constant 0 : i32
    %c0_i32_0 = arith.constant 0 : i32
    %c0_i32_1 = arith.constant 0 : i32
    return %c0_i32, %c0_i32_0 : i32, i32
  }
  func.func @transform_3(%arg0: i32) -> (i32, i32) {
    %c0_i32 = arith.constant 0 : i32
    %c0_i32_0 = arith.constant 0 : i32
    %c0_i32_1 = arith.constant 0 : i32
    return %c0_i32, %c0_i32_0 : i32, i32
  }
  func.func @transform_4(%arg0: i32) -> (i32, i32) {
    %c0_i32 = arith.constant 0 : i32
    %c0_i32_0 = arith.constant 0 : i32
    %c0_i32_1 = arith.constant 0 : i32
    return %c0_i32, %c0_i32_0 : i32, i32
  }
  func.func @transform_5(%arg0: i32) -> (i32, i32) {
    %c0_i32 = arith.constant 0 : i32
    %c0_i32_0 = arith.constant 0 : i32
    %c0_i32_1 = arith.constant 0 : i32
    return %c0_i32, %c0_i32_0 : i32, i32
  }
  func.func @transform_6(%arg0: i32) -> (i32, i32) {
    %c0_i32 = arith.constant 0 : i32
    %c0_i32_0 = arith.constant 0 : i32
    %c0_i32_1 = arith.constant 0 : i32
    return %c0_i32, %c0_i32_0 : i32, i32
  }
  func.func @transform_7(%arg0: i32) -> (i32, i32) {
    %c0_i32 = arith.constant 0 : i32
    %c0_i32_0 = arith.constant 0 : i32
    %c0_i32_1 = arith.constant 0 : i32
    return %c0_i32, %c0_i32_0 : i32, i32
  }
  func.func @transform_8(%arg0: i32) -> (i32, i32) {
    %c0_i32 = arith.constant 0 : i32
    %c0_i32_0 = arith.constant 0 : i32
    %c0_i32_1 = arith.constant 0 : i32
    return %c0_i32, %c0_i32_0 : i32, i32
  }
  func.func @transform_9(%arg0: i32) -> (i32, i32) {
    %c0_i32 = arith.constant 0 : i32
    %c0_i32_0 = arith.constant 0 : i32
    %c0_i32_1 = arith.constant 0 : i32
    return %c0_i32, %c0_i32_0 : i32, i32
  }
  func.func @transform_10(%arg0: i32) -> (i32, i32) {
    %c0_i32 = arith.constant 0 : i32
    %c0_i32_0 = arith.constant 0 : i32
    return %arg0, %c0_i32 : i32, i32
  }
}

</mosaic_0001>

<bundles_post_ra>
// kernel: fused_forward.1
= control target key start
LH: loop header
LB: loop body
LE: loop exit
PB: predicated region body
PF: predicated region fallthrough
CT: control target
= control target key end

     0   :  { %v999_v1 = vmov 0   ;;  %vm93_vm0 = vcmask 261120   ;;  %v48_v56 = vlaneseq  ;;  %s1326_s2 = inlined_call_operand.vmem [shape: bf16[32,256], index: 2, kind: input, shape index: {}]   ;;  %s1327_s0 = inlined_call_operand.vmem [shape: bf16[48,32], index: 0, kind: input, shape index: {}]   ;;  %s1328_s4 = inlined_call_operand.vmem [shape: bf16[256,256], index: 4, kind: input, shape index: {}]   ;;  %s1329_s1 = inlined_call_operand.vmem [shape: f32[48,1], index: 1, kind: input, shape index: {}]   ;;  %s1330_s8 = inlined_call_operand.vmem [shape: bf16[256,128], index: 8, kind: input, shape index: {}]   ;;  %s1331_s3 = inlined_call_operand.vmem [shape: f32[1,256], index: 3, kind: input, shape index: {}]   ;;  %s1332_s6 = inlined_call_operand.vmem [shape: f32[1,256], index: 6, kind: input, shape index: {}]   ;;  %s1333_s5 = inlined_call_operand.vmem [shape: f32[1,256], index: 5, kind: input, shape index: {}]   ;;  %s1334_s7 = inlined_call_operand.vmem [shape: f32[1,256], index: 7, kind: input, shape index: {}]   ;;  %s1335_s9 = inlined_call_operand.vmem [shape: f32[1,128], index: 9, kind: input, shape index: {}]   ;;  %s1336_s10 = inlined_call_operand.vmem [shape: f32[48,128], index: 10, kind: output, shape index: {}]  }
   0x1   :  { %v902_v0 = vld [vmem:[%s1326_s2 + $0x4] ss:$8 sps:$4 sm:$0xff]   ;;  %135 = vmatprep.mubr.bf16.mxu0 %v999_v1  ;;  %900 = vset.pattern.permute.xlu0 %v999_v1  ;;  %v904_v2 = vld [vmem:[%s1326_s2] ss:$8 sps:$4 sm:$0xff]   ;;  %v905_v3 = vld [vmem:[%s1326_s2 + $0x14] ss:$8 sps:$4 sm:$0xff]  }
   0x2   :  { %901 = vset.pattern.permute.xlu1 %v999_v1  ;;  %103 = vmatprep.subr.bf16.mxu0 %v902_v0  ;;  %v907_v4 = vld [vmem:[%s1326_s2 + $0x10] ss:$8 sps:$4 sm:$0xff]   ;;  %v908_v5 = vld [vmem:[%s1327_s0] sm:$0xff]   ;;  %v914_v8 = vld [vmem:[%s1328_s4 + $0x14] ss:$8 sps:$4 sm:$0xff]   ;;  %v49_v57 = vshrl.u32 %v48_v56, 7 }
   0x3   :  { %104 = vmatpush1.bf16.msra.mxu0 %v904_v2  ;;  %v911_v6 = vld [vmem:[%s1328_s4 + $0x4] ss:$8 sps:$4 sm:$0xff]   ;;  %v913_v7 = vld [vmem:[%s1328_s4] ss:$8 sps:$4 sm:$0xff]   ;;  %v916_v9 = vld [vmem:[%s1328_s4 + $0x10] ss:$8 sps:$4 sm:$0xff]  }
   0x4   :  { %105 = vmatprep.subr.bf16.mxu0 %v905_v3  ;;  %388 = vmatprep.subr.bf16.mxu1 %v911_v6  ;;  %v917_v10 = vld [vmem:[%s1328_s4 + $0x24] ss:$8 sps:$4 sm:$0xff]   ;;  %v919_v11 = vld [vmem:[%s1328_s4 + $0x20] ss:$8 sps:$4 sm:$0xff]   ;;  %v920_v13 = vld [vmem:[%s1328_s4 + $0x34] ss:$8 sps:$4 sm:$0xff]  }
   0x5   :  { %389 = vmatpush1.bf16.msra.mxu1 %v913_v7  ;;  %v909_v12 = vld [vmem:[%s1327_s0 + $0x8] sm:$0xff]   ;;  %v922_v14 = vld [vmem:[%s1328_s4 + $0x30] ss:$8 sps:$4 sm:$0xff]   ;;  %v926_v18 = vld [vmem:[%s1328_s4 + $0x54] ss:$8 sps:$4 sm:$0xff]   ;;  %v1224_v58 = vsub.s32 0, %v49_v57 }
   0x6   :  { %390 = vmatprep.subr.bf16.mxu1 %v914_v8  ;;  %v923_v15 = vld [vmem:[%s1328_s4 + $0x44] ss:$8 sps:$4 sm:$0xff]   ;;  %v925_v16 = vld [vmem:[%s1328_s4 + $0x40] ss:$8 sps:$4 sm:$0xff]   ;;  %v910_v17 = vld [vmem:[%s1327_s0 + $0x10] sm:$0xff]   ;;  %v1229_v60 = vsub.s32 1, %v49_v57 }
   0x7   :  { %106 = vmatpush1.bf16.msra.mxu0 %v907_v4  ;;  %v928_v19 = vld [vmem:[%s1328_s4 + $0x50] ss:$8 sps:$4 sm:$0xff]   ;;  %v929_v20 = vld [vmem:[%s1328_s4 + $0x64] ss:$8 sps:$4 sm:$0xff]   ;;  %v931_v21 = vld [vmem:[%s1328_s4 + $0x60] ss:$8 sps:$4 sm:$0xff]  }
   0x8   :  { %v932_v22 = vld [vmem:[%s1328_s4 + $0x74] ss:$8 sps:$4 sm:$0xff]   ;;  %v934_v23 = vld [vmem:[%s1328_s4 + $0x70] ss:$8 sps:$4 sm:$0xff]   ;;  %v935_v24 = vld [vmem:[%s1328_s4 + $0x84] ss:$8 sps:$4 sm:$0xff]  }
   0x9   :  { %391 = vmatpush1.bf16.msra.mxu1 %v916_v9  ;;  %v937_v25 = vld [vmem:[%s1328_s4 + $0x80] ss:$8 sps:$4 sm:$0xff]   ;;  %v938_v26 = vld [vmem:[%s1328_s4 + $0x94] ss:$8 sps:$4 sm:$0xff]   ;;  %v940_v27 = vld [vmem:[%s1328_s4 + $0x90] ss:$8 sps:$4 sm:$0xff]  }
   0xa   :  { %807 = vmatmul.mubr.msk.bf16.vlgmr.msra.gmra.mrb[0].mxu0 %vm93_vm0, %v908_v5  ;;  %392 = vmatprep.subr.bf16.mxu1 %v917_v10  ;;  %v941_v28 = vld [vmem:[%s1328_s4 + $0xa4] ss:$8 sps:$4 sm:$0xff]   ;;  %v943_v29 = vld [vmem:[%s1328_s4 + $0xa0] ss:$8 sps:$4 sm:$0xff]   ;;  %v944_v30 = vld [vmem:[%s1328_s4 + $0xb4] ss:$8 sps:$4 sm:$0xff]  }
   0xb   :  { %145 = vmatprep.mubr.bf16.mxu0 %v999_v1  ;;  %v946_v31 = vld [vmem:[%s1328_s4 + $0xb0] ss:$8 sps:$4 sm:$0xff]   ;;  %v947_v32 = vld [vmem:[%s1328_s4 + $0xc4] ss:$8 sps:$4 sm:$0xff]   ;;  %v949_v33 = vld [vmem:[%s1328_s4 + $0xc0] ss:$8 sps:$4 sm:$0xff]  }
   0xc   :  { %v950_v34 = vld [vmem:[%s1328_s4 + $0xd4] ss:$8 sps:$4 sm:$0xff]   ;;  %v952_v35 = vld [vmem:[%s1328_s4 + $0xd0] ss:$8 sps:$4 sm:$0xff]   ;;  %v953_v36 = vld [vmem:[%s1328_s4 + $0xe4] ss:$8 sps:$4 sm:$0xff]  }
   0xd   :  { %393 = vmatpush1.bf16.msra.mxu1 %v919_v11  ;;  %v955_v37 = vld [vmem:[%s1328_s4 + $0xe0] ss:$8 sps:$4 sm:$0xff]   ;;  %v956_v38 = vld [vmem:[%s1328_s4 + $0xf4] ss:$8 sps:$4 sm:$0xff]   ;;  %v958_v39 = vld [vmem:[%s1328_s4 + $0xf0] ss:$8 sps:$4 sm:$0xff]  }
   0xe   :  { %394 = vmatprep.subr.bf16.mxu1 %v920_v13  ;;  %v451_v40 = vld [vmem:[%s1329_s1] sm:$0xff]  ;;  %v453_v41 = vld [vmem:[%s1329_s1 + $0x10] sm:$0xff]  ;;  %v452_v42 = vld [vmem:[%s1329_s1 + $0x8] sm:$0xff] }
   0xf   :  { %460 = vperm.xlu0 %900, %v451_v40   ;;  %470 = vperm.xlu1 %901, %v453_v41   ;;  %v454_v43 = vld [vmem:[%s1329_s1 + $0x18] sm:$0xff]  ;;  %v959_v44 = vld [vmem:[%s1330_s8 + $0x40] sm:$0xff]   ;;  %v961_v47 = vld [vmem:[%s1330_s8 + $0x48] sm:$0xff]  }
  0x10   :  { %v960_v45 = vld [vmem:[%s1330_s8] sm:$0xff]   ;;  %865 = vmatprep.subr.bf16.mxu0 %v959_v44  ;;  %v456_v48 = vld [vmem:[%s1329_s1 + $0x28] sm:$0xff]  ;;  %v963_v50 = vld [vmem:[%s1330_s8 + $0x50] sm:$0xff]  }
  0x11   :  { %395 = vmatpush1.bf16.msra.mxu1 %v922_v14  ;;  %v455_v46 = vld [vmem:[%s1329_s1 + $0x20] sm:$0xff]  ;;  %866 = vmatpush3.bf16.msra.mxu0 %v960_v45  ;;  %v962_v49 = vld [vmem:[%s1330_s8 + $0x8] sm:$0xff]   ;;  %v964_v51 = vld [vmem:[%s1330_s8 + $0x10] sm:$0xff]  }
  0x12   :  { %808 = vmatmul.mubr.msk.bf16.gmra.mrb[4].mxu0 %vm93_vm0, %v909_v12  ;;  %396 = vmatprep.subr.bf16.mxu1 %v923_v15  ;;  %v965_v52 = vld [vmem:[%s1330_s8 + $0x58] sm:$0xff]   ;;  %v967_v54 = vld [vmem:[%s1330_s8 + $0x60] sm:$0xff]   ;;  %v969_v41 = vld [vmem:[%s1330_s8 + $0x68] sm:$0xff]  }
  0x13   :  { %155 = vmatprep.mubr.bf16.mxu0 %v999_v1  ;;  %465 = vperm.xlu0 %900, %v452_v42   ;;  %v966_v53 = vld [vmem:[%s1330_s8 + $0x18] sm:$0xff]   ;;  %v968_v55 = vld [vmem:[%s1330_s8 + $0x20] sm:$0xff]   ;;  %v970_v42 = vld [vmem:[%s1330_s8 + $0x28] sm:$0xff]  }
  0x14   :  { %475 = vperm.xlu1 %901, %v454_v43   ;;  %867 = vmatprep.subr.bf16.mxu0 %v961_v47  ;;  %v46_v59 = vld [vmem:[%s1331_s3] sm:$0x3]  ;;  %v971_v43 = vld [vmem:[%s1330_s8 + $0x70] sm:$0xff]   ;;  %v973_v45 = vld [vmem:[%s1330_s8 + $0x78] sm:$0xff]  }
  0x15   :  { %397 = vmatpush1.bf16.msra.mxu1 %v925_v16  ;;  %868 = vmatpush3.bf16.msra.mxu0 %v962_v49  ;;  %v51_v61 = vrot.slane %v46_v59, %v1224_v58  ;;  %v55_v62 = vrot.slane %v46_v59, %v1229_v60  ;;  %v972_v44 = vld [vmem:[%s1330_s8 + $0x30] sm:$0xff]   ;;  %v457_v47 = vld [vmem:[%s1332_s6] sm:$0x3] }
  0x16   :  { %398 = vmatprep.subr.bf16.mxu1 %v926_v18  ;;  %869 = vmatprep.subr.bf16.mxu0 %v963_v50  ;;  %v1258_v49 = vrot.slane %v457_v47, %v1224_v58  ;;  %v523_v57 = vld [vmem:[%s1334_s7] sm:$0x3] }
  0x17   :  { %480 = vperm.xlu0 %900, %v455_v46   ;;  %v974_v46 = vld [vmem:[%s1330_s8 + $0x38] sm:$0xff]  }
  0x18   :  { %485 = vperm.xlu1 %901, %v456_v48   ;;  %v216_v48 = vld [vmem:[%s1333_s5] sm:$0x3] }
  0x19   :  { %399 = vmatpush1.bf16.msra.mxu1 %v928_v19  ;;  %870 = vmatpush3.bf16.msra.mxu0 %v964_v51  ;;  %v1261_v51 = vrot.slane %v216_v48, %v1224_v58 }
  0x1a   :  { %809 = vmatmul.mubr.msk.bf16.gmra.mrb[8].mxu0 %vm93_vm0, %v910_v17  ;;  %400 = vmatprep.subr.bf16.mxu1 %v929_v20 }
  0x1b   :  { %871 = vmatprep.subr.bf16.mxu0 %v965_v52  ;;  %v1264_v52 = vrot.slane %v457_v47, %v1229_v60 }
  0x1d   :  { %401 = vmatpush1.bf16.msra.mxu1 %v931_v21  ;;  %872 = vmatpush3.bf16.msra.mxu0 %v966_v53  ;;  %v1267_v53 = vrot.slane %v216_v48, %v1229_v60 }
  0x1e   :  { %402 = vmatprep.subr.bf16.mxu1 %v932_v22  ;;  %873 = vmatprep.subr.bf16.mxu0 %v967_v54 }
  0x21   :  { %403 = vmatpush1.bf16.msra.mxu1 %v934_v23  ;;  %874 = vmatpush3.bf16.msra.mxu0 %v968_v55 }
  0x22   :  { %404 = vmatprep.subr.bf16.mxu1 %v935_v24  ;;  %875 = vmatprep.subr.bf16.mxu0 %v969_v41 }
  0x25   :  { %405 = vmatpush1.bf16.msra.mxu1 %v937_v25  ;;  %876 = vmatpush3.bf16.msra.mxu0 %v970_v42 }
  0x26   :  { %406 = vmatprep.subr.bf16.mxu1 %v938_v26  ;;  %877 = vmatprep.subr.bf16.mxu0 %v971_v43 }
  0x29   :  { %407 = vmatpush1.bf16.msra.mxu1 %v940_v27  ;;  %878 = vmatpush3.bf16.msra.mxu0 %v972_v44 }
  0x2a   :  { %408 = vmatprep.subr.bf16.mxu1 %v941_v28  ;;  %879 = vmatprep.subr.bf16.mxu0 %v973_v45 }
  0x2d   :  { %409 = vmatpush1.bf16.msra.mxu1 %v943_v29  ;;  %880 = vmatpush3.bf16.msra.mxu0 %v974_v46 }
  0x2e   :  { %410 = vmatprep.subr.bf16.mxu1 %v944_v30 }
  0x31   :  { %411 = vmatpush1.bf16.msra.mxu1 %v946_v31 }
  0x32   :  { %412 = vmatprep.subr.bf16.mxu1 %v947_v32 }
  0x35   :  { %413 = vmatpush1.bf16.msra.mxu1 %v949_v33 }
  0x36   :  { %414 = vmatprep.subr.bf16.mxu1 %v950_v34 }
  0x39   :  { %415 = vmatpush1.bf16.msra.mxu1 %v952_v35 }
  0x3a   :  { %416 = vmatprep.subr.bf16.mxu1 %v953_v36 }
  0x3d   :  { %417 = vmatpush1.bf16.msra.mxu1 %v955_v37 }
  0x3e   :  { %418 = vmatprep.subr.bf16.mxu1 %v956_v38 }
  0x41   :  { %419 = vmatpush1.bf16.msra.mxu1 %v958_v39 }
  0x8e   :  { %v461_v50 = vpop.permute.xlu0 %460 }
  0x8f   :  { %v499_v54 = vmul.f32 %v1258_v49, %v461_v50 }
  0xdd   :  { %v137_v63 = vpop.f32.mrb[0].mxu0 }
  0xde   :  { %v138_v0 = vadd.f32 %v137_v63, %v51_v61  ;;  %v139_v1 = vpop.f32.mrb[1].mxu0  ;;  %v466_v63 = vpop.permute.xlu0 %465 }
  0xdf   :  { %v140_v2 = vadd.f32 %v139_v1, %v55_v62  ;;  %v141_v3 = vpop.f32.mrb[2].mxu0 }
  0xe0   :  { %v142_v4 = vadd.f32 %v141_v3, %v51_v61  ;;  %v143_v5 = vpop.f32.mrb[3].mxu0  ;;  %v166_v7 = vmax.f32 %v138_v0, 0.0 }
  0xe1   :  { %v144_v6 = vadd.f32 %v143_v5, %v55_v62  ;;  %v167_v9 = vmax.f32 %v140_v2, 0.0  ;;  %v501_v2 = vmul.f32 %v1258_v49, %v466_v63 }
  0xe2   :  { %v168_v8 = vmax.f32 %v142_v4, 0.0  ;;  %v528_v4 = vrot.slane %v523_v57, %v1224_v58 }
  0xe3   :  { %v169_v10 = vmax.f32 %v144_v6, 0.0 }
  0xe4   :  { %v178_v11 = vpack.c.bf16 %v168_v8, %v166_v7  ;;  %v502_v7 = vmul.f32 %v1264_v52, %v466_v63  ;;  %v471_v8 = vpop.permute.xlu1 %470 }
  0xe5   :  { %v147_v12 = vpop.f32.mrb[4].mxu0  ;;  %v179_v13 = vpack.c.bf16 %v169_v10, %v167_v9  ;;  %v532_v10 = vrot.slane %v523_v57, %v1229_v60 }
  0xe6   :  { %v148_v14 = vadd.f32 %v147_v12, %v51_v61  ;;  %v149_v15 = vpop.f32.mrb[5].mxu0 }
  0xe7   :  { %v150_v16 = vadd.f32 %v149_v15, %v55_v62  ;;  %v151_v17 = vpop.f32.mrb[6].mxu0  ;;  %420 = vmatprep.mubr.bf16.mxu1 %v179_v13 }
  0xe8   :  { %v152_v18 = vadd.f32 %v151_v17, %v51_v61  ;;  %v153_v19 = vpop.f32.mrb[7].mxu0  ;;  %421 = vmatmul.mubr.bf16.vlgmr.msra.gmra.mrb[0].mxu1 %v178_v11  ;;  %v170_v21 = vmax.f32 %v148_v14, 0.0  ;;  %v503_v14 = vmul.f32 %v1258_v49, %v471_v8 }
  0xe9   :  { %v154_v20 = vadd.f32 %v153_v19, %v55_v62  ;;  %v171_v23 = vmax.f32 %v150_v16, 0.0 }
  0xea   :  { %v172_v22 = vmax.f32 %v152_v18, 0.0 }
  0xeb   :  { %v173_v24 = vmax.f32 %v154_v20, 0.0 }
  0xec   :  { %v180_v25 = vpack.c.bf16 %v172_v22, %v170_v21  ;;  %v504_v22 = vmul.f32 %v1264_v52, %v471_v8 }
  0xed   :  { %v181_v26 = vpack.c.bf16 %v173_v24, %v171_v23  ;;  %v157_v27 = vpop.f32.mrb[8].mxu0  ;;  %v476_v23 = vpop.permute.xlu1 %475 }
  0xee   :  { %v158_v28 = vadd.f32 %v157_v27, %v51_v61  ;;  %v159_v29 = vpop.f32.mrb[9].mxu0 }
  0xef   :  { %v160_v30 = vadd.f32 %v159_v29, %v55_v62  ;;  %v161_v31 = vpop.f32.mrb[10].mxu0  ;;  %430 = vmatprep.mubr.bf16.mxu1 %v181_v26  ;;  %v505_v26 = vmul.f32 %v1258_v49, %v476_v23 }
  0xf0   :  { %v162_v32 = vadd.f32 %v161_v31, %v51_v61  ;;  %v163_v33 = vpop.f32.mrb[11].mxu0  ;;  %431 = vmatmul.mubr.bf16.gmra.mrb[4].mxu1 %v180_v25  ;;  %v174_v35 = vmax.f32 %v158_v28, 0.0 }
  0xf1   :  { %v164_v34 = vadd.f32 %v163_v33, %v55_v62  ;;  %v175_v37 = vmax.f32 %v160_v30, 0.0  ;;  %v500_v62 = vmul.f32 %v1264_v52, %v461_v50  ;;  %v506_v30 = vmul.f32 %v1264_v52, %v476_v23 }
  0xf2   :  { %v176_v36 = vmax.f32 %v162_v32, 0.0 }
  0xf3   :  { %v177_v38 = vmax.f32 %v164_v34, 0.0  ;;  %v481_v34 = vpop.permute.xlu0 %480 }
  0xf4   :  { %v182_v39 = vpack.c.bf16 %v176_v36, %v174_v35  ;;  %v507_v42 = vmul.f32 %v1258_v49, %v481_v34  ;;  %v508_v46 = vmul.f32 %v1264_v52, %v481_v34 }
  0xf5   :  { %v183_v40 = vpack.c.bf16 %v177_v38, %v175_v37  ;;  %v486_v38 = vpop.permute.xlu1 %485 }
  0xf7   :  { %440 = vmatprep.mubr.bf16.mxu1 %v183_v40 }
  0xf8   :  { %441 = vmatmul.mubr.bf16.gmra.mrb[8].mxu1 %v182_v39 }
 0x1bb   :  { %v422_v55 = vpop.f32.mrb[0].mxu1 }
 0x1bc   :  { %v423_v59 = vadd.f32 %v422_v55, %v1261_v51  ;;  %v424_v61 = vpop.f32.mrb[1].mxu1 }
 0x1bd   :  { %v425_v0 = vadd.f32 %v424_v61, %v1267_v53  ;;  %v426_v1 = vpop.f32.mrb[2].mxu1  ;;  %v510_v61 = vmul.f32 %v1264_v52, %v486_v38 }
 0x1be   :  { %v511_v3 = vadd.f32 %v499_v54, %v423_v59  ;;  %v427_v5 = vadd.f32 %v426_v1, %v1261_v51  ;;  %v428_v6 = vpop.f32.mrb[3].mxu1  ;;  %v509_v54 = vmul.f32 %v1258_v49, %v486_v38 }
 0x1bf   :  { %v512_v9 = vadd.f32 %v500_v62, %v425_v0  ;;  %v429_v11 = vadd.f32 %v428_v6, %v1267_v53 }
 0x1c0   :  { %v513_v12 = vadd.f32 %v501_v2, %v427_v5  ;;  %v535_v15 = vadd.f32 %v528_v4, %v511_v3 }
 0x1c1   :  { %v514_v13 = vadd.f32 %v502_v7, %v429_v11  ;;  %v536_v17 = vadd.f32 %v532_v10, %v512_v9 }
 0x1c2   :  { %v537_v16 = vadd.f32 %v528_v4, %v513_v12 }
 0x1c3   :  { %v538_v18 = vadd.f32 %v532_v10, %v514_v13  ;;  %v432_v58 = vpop.f32.mrb[4].mxu1 }
 0x1c4   :  { %v547_v19 = vpack.c.bf16 %v537_v16, %v535_v15  ;;  %v433_v20 = vadd.f32 %v432_v58, %v1261_v51  ;;  %v434_v21 = vpop.f32.mrb[5].mxu1 }
 0x1c5   :  { %v435_v60 = vadd.f32 %v434_v21, %v1267_v53  ;;  %v436_v24 = vpop.f32.mrb[6].mxu1  ;;  %v548_v25 = vpack.c.bf16 %v538_v18, %v536_v17 }
 0x1c6   :  { %v515_v27 = vadd.f32 %v503_v14, %v433_v20  ;;  %v437_v28 = vadd.f32 %v436_v24, %v1261_v51  ;;  %v438_v29 = vpop.f32.mrb[7].mxu1 }
 0x1c7   :  { %v516_v31 = vadd.f32 %v504_v22, %v435_v60  ;;  %v439_v32 = vadd.f32 %v438_v29, %v1267_v53  ;;  %720 = vmatprep.mubr.bf16.mxu0 %v548_v25 }
 0x1c8   :  { %v517_v33 = vadd.f32 %v505_v26, %v437_v28  ;;  %721 = vmatmul.mubr.bf16.vlgmr.msra.gmra.mrb[12].mxu0 %v547_v19  ;;  %v539_v36 = vadd.f32 %v528_v4, %v515_v27 }
 0x1c9   :  { %v518_v35 = vadd.f32 %v506_v30, %v439_v32  ;;  %v540_v39 = vadd.f32 %v532_v10, %v516_v31 }
 0x1ca   :  { %v541_v37 = vadd.f32 %v528_v4, %v517_v33 }
 0x1cb   :  { %v542_v40 = vadd.f32 %v532_v10, %v518_v35  ;;  %v442_v41 = vpop.f32.mrb[8].mxu1 }
 0x1cc   :  { %v443_v43 = vadd.f32 %v442_v41, %v1261_v51  ;;  %v444_v44 = vpop.f32.mrb[9].mxu1  ;;  %v549_v45 = vpack.c.bf16 %v541_v37, %v539_v36  ;;  %v746_v37 = vand.u32 127, %v48_v56 }
 0x1cd   :  { %v445_v47 = vadd.f32 %v444_v44, %v1267_v53  ;;  %v446_v48 = vpop.f32.mrb[10].mxu1  ;;  %v550_v50 = vpack.c.bf16 %v542_v40, %v540_v39 }
 0x1ce   :  { %v519_v55 = vadd.f32 %v507_v42, %v443_v43  ;;  %v447_v57 = vadd.f32 %v446_v48, %v1261_v51  ;;  %v448_v59 = vpop.f32.mrb[11].mxu1  ;;  %v842_v51 = vld [vmem:[%s1335_s9] ss:$0 sm:$0xff]  ;;  %vm747_vm1 = vcmp.ge.s32.totalorder %v746_v37, 4 }
 0x1cf   :  { %v520_v62 = vadd.f32 %v508_v46, %v445_v47  ;;  %v449_v63 = vadd.f32 %v448_v59, %v1267_v53  ;;  %728 = vmatprep.mubr.bf16.mxu0 %v550_v50 }
 0x1d0   :  { %v521_v0 = vadd.f32 %v509_v54, %v447_v57  ;;  %729 = vmatmul.mubr.bf16.gmra.mrb[16].mxu0 %v549_v45  ;;  %v543_v2 = vadd.f32 %v528_v4, %v519_v55 }
 0x1d1   :  { %v522_v1 = vadd.f32 %v510_v61, %v449_v63  ;;  %v544_v5 = vadd.f32 %v532_v10, %v520_v62 }
 0x1d2   :  { %v545_v3 = vadd.f32 %v528_v4, %v521_v0 }
 0x1d3   :  { %v546_v6 = vadd.f32 %v532_v10, %v522_v1 }
 0x1d4   :  { %v551_v7 = vpack.c.bf16 %v545_v3, %v543_v2 }
 0x1d5   :  { %v552_v8 = vpack.c.bf16 %v546_v6, %v544_v5 }
 0x1d7   :  { %736 = vmatprep.mubr.bf16.mxu0 %v552_v8 }
 0x1d8   :  { %737 = vmatmul.mubr.bf16.gmra.mrb[20].mxu0 %v551_v7 }
 0x29b   :  { %v881_v49 = vpop.f32.mrb[12].mxu0 }
 0x29c   :  { %v882_v52 = vpop.f32.mrb[13].mxu0 }
 0x29d   :  { %v883_v9 = vadd.f32 %v882_v52, %v881_v49  ;;  %v884_v53 = vpop.f32.mrb[14].mxu0 }
 0x29e   :  { %v885_v11 = vpop.f32.mrb[15].mxu0 }
 0x29f   :  { %v723_v12 = vadd.f32 %v883_v9, %v842_v51  ;;  %v886_v13 = vadd.f32 %v885_v11, %v884_v53 }
 0x2a1   :  { %v859_v14 = vmul.f32 -1.442695, %v723_v12  ;;  %v726_v15 = vadd.f32 %v886_v13, %v842_v51 }
 0x2a3   :  { %975 = vpow2.f32 %v859_v14  ;;  %v860_v4 = vmul.f32 -1.442695, %v726_v15  ;;  %v887_v10 = vpop.f32.mrb[16].mxu0 }
 0x2a4   :  { %v888_v16 = vpop.f32.mrb[17].mxu0 }
 0x2a5   :  { %977 = vpow2.f32 %v860_v4  ;;  %v889_v17 = vadd.f32 %v888_v16, %v887_v10  ;;  %v890_v18 = vpop.f32.mrb[18].mxu0 }
 0x2a6   :  { %v891_v58 = vpop.f32.mrb[19].mxu0 }
 0x2a7   :  { %v731_v19 = vadd.f32 %v889_v17, %v842_v51  ;;  %v892_v20 = vadd.f32 %v891_v58, %v890_v18 }
 0x2a9   :  { %v861_v21 = vmul.f32 -1.442695, %v731_v19  ;;  %v734_v22 = vadd.f32 %v892_v20, %v842_v51 }
 0x2ab   :  { %979 = vpow2.f32 %v861_v21  ;;  %v862_v23 = vmul.f32 -1.442695, %v734_v22  ;;  %v893_v60 = vpop.f32.mrb[20].mxu0 }
 0x2ac   :  { %v894_v24 = vpop.f32.mrb[21].mxu0 }
 0x2ad   :  { %v976_v25 = vpop.eup %975  ;;  %981 = vpow2.f32 %v862_v23  ;;  %v895_v26 = vadd.f32 %v894_v24, %v893_v60  ;;  %v896_v27 = vpop.f32.mrb[22].mxu0 }
 0x2ae   :  { %v766_v28 = vadd.f32 1.0, %v976_v25  ;;  %v897_v29 = vpop.f32.mrb[23].mxu0 }
 0x2af   :  { %v978_v30 = vpop.eup %977  ;;  %v739_v31 = vadd.f32 %v895_v26, %v842_v51  ;;  %v898_v32 = vadd.f32 %v897_v29, %v896_v27 }
 0x2b0   :  { %983 = vrcp.f32 %v766_v28  ;;  %v767_v33 = vadd.f32 1.0, %v978_v30 }
 0x2b1   :  { %v863_v34 = vmul.f32 -1.442695, %v739_v31  ;;  %v742_v35 = vadd.f32 %v898_v32, %v842_v51 }
 0x2b2   :  { %985 = vrcp.f32 %v767_v33 }
 0x2b3   :  { %987 = vpow2.f32 %v863_v34  ;;  %v864_v36 = vmul.f32 -1.442695, %v742_v35 }
 0x2b5   :  { %v980_v38 = vpop.eup %979  ;;  %989 = vpow2.f32 %v864_v36 }
 0x2b6   :  { %v768_v39 = vadd.f32 1.0, %v980_v38 }
 0x2b7   :  { %v982_v40 = vpop.eup %981 }
 0x2b8   :  { %991 = vrcp.f32 %v768_v39  ;;  %v769_v41 = vadd.f32 1.0, %v982_v40 }
 0x2ba   :  { %v984_v42 = vpop.eup %983  ;;  %993 = vrcp.f32 %v769_v41 }
 0x2bb   :  { %v784_v43 = vsel %vm747_vm1, %v984_v42, %v723_v12 }
 0x2bc   :  { %v986_v44 = vpop.eup %985  ;;  %790 = vst [vmem:[%s1336_s10] sm:$0xff] %v784_v43 }
 0x2bd   :  { %v988_v45 = vpop.eup %987  ;;  %v785_v46 = vsel %vm747_vm1, %v986_v44, %v726_v15 }
 0x2be   :  { %791 = vst [vmem:[%s1336_s10 + $0x8] sm:$0xff] %v785_v46  ;;  %v770_v56 = vadd.f32 1.0, %v988_v45 }
 0x2bf   :  { %v990_v47 = vpop.eup %989 }
 0x2c0   :  { %995 = vrcp.f32 %v770_v56  ;;  %v771_v48 = vadd.f32 1.0, %v990_v47 }
 0x2c2   :  { %v992_v50 = vpop.eup %991  ;;  %997 = vrcp.f32 %v771_v48 }
 0x2c3   :  { %v786_v54 = vsel %vm747_vm1, %v992_v50, %v731_v19 }
 0x2c4   :  { %v994_v55 = vpop.eup %993  ;;  %792 = vst [vmem:[%s1336_s10 + $0x10] sm:$0xff] %v786_v54 }
 0x2c5   :  { %v787_v57 = vsel %vm747_vm1, %v994_v55, %v734_v22 }
 0x2c6   :  { %793 = vst [vmem:[%s1336_s10 + $0x18] sm:$0xff] %v787_v57 }
 0x2ca   :  { %v996_v59 = vpop.eup %995 }
 0x2cb   :  { %v788_v61 = vsel %vm747_vm1, %v996_v59, %v739_v31 }
 0x2cc   :  { %v998_v62 = vpop.eup %997  ;;  %794 = vst [vmem:[%s1336_s10 + $0x20] sm:$0xff] %v788_v61 }
 0x2cd   :  { %v789_v63 = vsel %vm747_vm1, %v998_v62, %v742_v35 }
 0x2ce   :  { %795 = vst [vmem:[%s1336_s10 + $0x28] sm:$0xff] %v789_v63 }

</bundles_post_ra>
